<compile_context>
chip_gen: v5e
topology: v5e:2x2
jax: 0.10.0
libtpu: 0.0.40
codegen_flags: <defaults>
</compile_context>

<pallas_src>
import functools
import math

import jax
import jax.numpy as jnp
from jax.experimental import pallas as pl
from jax.experimental.pallas import tpu as pltpu


def _vmem_limit_bytes():
    """Per-generation scoped-VMEM budget."""
    try:
        kind = jax.devices()[0].device_kind.lower()
    except Exception:  # pragma: no cover
        kind = ""
    if "v7" in kind or "tpu7" in kind or "7x" in kind:
        return 56 * 1024 * 1024           # v7x: 64 MiB physical per TC
    if any(g in kind for g in ("v4", "v5", "v6")):
        return 100 * 1024 * 1024          # 128 MiB physical VMEM
    return 48 * 1024 * 1024               # unknown / older: stay conservative


def _pick_tile(dim, target):
    """Largest tile <= target dividing dim, preferring lane-dense multiples of
    128, then sublane multiples of 8, else the full dim."""
    if dim <= target:
        return dim
    t = (target // 128) * 128
    while t >= 128:
        if dim % t == 0:
            return t
        t -= 128
    t = (target // 8) * 8
    while t >= 8:
        if dim % t == 0:
            return t
        t -= 8
    # TODO(synk): pad the sequence (with kv masking) instead of falling back
    # to a degenerate / full-size tile for awkward sequence lengths.
    return dim


def _pick_weight_cols(d, cap=1024):
    """Column tile for projection weights: full width when small, otherwise a
    128-multiple divisor so per-weight VMEM stays ~ d * cap elements."""
    if d <= cap:
        return d
    t = (cap // 128) * 128
    while t >= 128:
        if d % t == 0:
            return t
        t -= 128
    return d


def _kv_proj_kernel(kx_ref, vx_ref, wk_ref, wv_ref, bk_ref, bv_ref,
                    ko_ref, vo_ref):
    """Fused K/V projections for one (batch, seq-tile, weight-column-tile)."""
    kp = jnp.dot(kx_ref[...], wk_ref[...],
                 preferred_element_type=jnp.float32) + bk_ref[...]
    vp = jnp.dot(vx_ref[...], wv_ref[...],
                 preferred_element_type=jnp.float32) + bv_ref[...]
    ko_ref[...] = kp.astype(ko_ref.dtype)
    vo_ref[...] = vp.astype(vo_ref.dtype)


def _flash_attn_kernel(qx_ref, wq_ref, bq_ref, k_ref, v_ref, wo_ref, bo_ref,
                       o_ref, q_sc, m_sc, l_sc, acc_sc, *,
                       num_heads, d_k, scale, compute_dtype, approx_recip,
                       slab_updates):
    """Online-softmax attention over one (q-tile, kv-tile), with the Q
    projection fused into the kv==0 step and W_o fused into the finalize.

    Scratch (all (TQ, D)):
      q_sc   : projected + pre-scaled Q (f32)
      m_sc   : running max, replicated over each head's d_k lanes (f32)
      l_sc   : running softmax denominator, replicated per head (f32)
      acc_sc : running output numerator, lane-dense head slab (f32)
    """
    ki = pl.program_id(2)
    tq = q_sc.shape[0]

    @pl.when(ki == 0)
    def _init():
        # Fused Q projection (+bias, + 1/sqrt(d_k) scale).  qx/wq/bq block
        # indices are constant along the kv axis, so no extra HBM traffic.
        qp = jnp.dot(qx_ref[...], wq_ref[...],
                     preferred_element_type=jnp.float32) + bq_ref[...]
        q_sc[...] = qp * scale
        m_sc[...] = jnp.full(m_sc.shape, -jnp.inf, dtype=m_sc.dtype)
        l_sc[...] = jnp.zeros(l_sc.shape, dtype=l_sc.dtype)
        acc_sc[...] = jnp.zeros(acc_sc.shape, dtype=acc_sc.dtype)

    q = q_sc[...].astype(compute_dtype)   # (TQ, D), projected & pre-scaled
    k = k_ref[...]                         # (TK, D)
    v = v_ref[...]                         # (TK, D)
    m_prev = m_sc[...]                     # (TQ, D)

    m_new_parts, psum_parts, pv_parts = [], [], []
    # Static unrolled loop over heads; heads stay packed along the lane (D)
    # axis (static lane slices, no lane-splitting reshape).
    for h in range(num_heads):
        lo = h * d_k
        qh = q[:, lo:lo + d_k]            # (TQ, d_k)
        kh = k[:, lo:lo + d_k]            # (TK, d_k)
        vh = v[:, lo:lo + d_k]            # (TK, d_k)

        # scores = qh @ kh^T as a last-axis contraction (no K transpose).
        s = jax.lax.dot_general(qh, kh, (((1,), (1,)), ((), ())),
                                preferred_element_type=jnp.float32)  # (TQ,TK)

        # Lanes of m_prev within a head are identical; the lane reduce just
        # extracts that shared value as a (TQ, 1) column.
        m_prev_h = jnp.max(m_prev[:, lo:lo + d_k], axis=-1, keepdims=True)
        m_new_h = jnp.maximum(m_prev_h, jnp.max(s, axis=-1, keepdims=True))
        p = jnp.exp(s - m_new_h)                                     # (TQ,TK)
        psum_h = jnp.sum(p, axis=-1, keepdims=True)                  # (TQ, 1)
        pv_h = jnp.dot(p.astype(compute_dtype), vh,
                       preferred_element_type=jnp.float32)           # (TQ,d_k)

        if slab_updates:
            m_new_parts.append(jnp.broadcast_to(m_new_h, (tq, d_k)))
            psum_parts.append(jnp.broadcast_to(psum_h, (tq, d_k)))
            pv_parts.append(pv_h)
        else:
            # Conservative path: per-head (masked) scratch updates.
            alpha_h = jnp.exp(m_prev_h - m_new_h)
            l_sc[:, lo:lo + d_k] = alpha_h * l_sc[:, lo:lo + d_k] + psum_h
            acc_sc[:, lo:lo + d_k] = alpha_h * acc_sc[:, lo:lo + d_k] + pv_h
            m_sc[:, lo:lo + d_k] = jnp.broadcast_to(m_new_h, (tq, d_k))

    if slab_updates:
        # Assemble lane-dense (TQ, D) slabs so the running-state update is
        # three full-width unmasked stores per kv step instead of 3*H masked
        # partial-vreg stores hammering the single store slot.
        m_new = jnp.concatenate(m_new_parts, axis=-1)                # (TQ, D)
        psum = jnp.concatenate(psum_parts, axis=-1)                  # (TQ, D)
        pv = jnp.concatenate(pv_parts, axis=-1)                      # (TQ, D)
        alpha = jnp.exp(m_prev - m_new)                              # (TQ, D)
        l_sc[...] = alpha * l_sc[...] + psum
        acc_sc[...] = alpha * acc_sc[...] + pv
        m_sc[...] = m_new

    @pl.when(ki == pl.num_programs(2) - 1)
    def _finalize():
        inv_l = pl.reciprocal(l_sc[...], approx=approx_recip)
        attn = (acc_sc[...] * inv_l).astype(compute_dtype)  # combine_heads (lane-dense)
        out = jnp.dot(attn, wo_ref[...],
                      preferred_element_type=jnp.float32) + bo_ref[...]
        o_ref[...] = out.astype(o_ref.dtype)


def _mha_impl(Q, K, V, params, num_heads, *, compute_dtype, q_tile, kv_tile,
              optimized):
    B, S, D = Q.shape
    assert D % num_heads == 0, "d_model must be divisible by num_heads"
    d_k = D // num_heads
    out_dtype = Q.dtype
    cdt = jnp.dtype(compute_dtype)
    approx_recip = bool(cdt != jnp.dtype(jnp.float32))
    vmem_limit = _vmem_limit_bytes()

    tq = _pick_tile(S, q_tile)
    tk = _pick_tile(S, kv_tile)
    assert S % tq == 0 and S % tk == 0

    def spec(shape, index_map, *, resident=False):
        # Resident operands (block index never changes) are single-buffered;
        # the default double buffer would only waste VMEM (critical for large
        # D on v7x's 64 MiB VMEM).
        if resident and optimized:
            return pl.BlockSpec(shape, index_map, pipeline_mode=pl.Buffered(1))
        return pl.BlockSpec(shape, index_map)

    # Cast matmul operands once in the wrapper (halves HBM traffic for bf16);
    # biases stay f32 (added to the f32 MXU accumulators).
    Qc, Kc, Vc = (x.astype(cdt) for x in (Q, K, V))
    wq, wk, wv, wo = (params[n].astype(cdt) for n in ("wq", "wk", "wv", "wo"))
    bq, bk, bv, bo = (params[n].astype(jnp.float32)
                      for n in ("bq", "bk", "bv", "bo"))

    # ---- 1) Fused K/V projections (column-tiled weights for large D) ------
    tn = _pick_weight_cols(D)
    n_col = D // tn
    kv_w_resident = (n_col == 1)   # single column tile -> constant block index

    act_spec = pl.BlockSpec((None, tq, D), lambda b, i, n: (b, i, 0))
    w_spec = spec((D, tn), lambda b, i, n: (0, n), resident=kv_w_resident)
    b_spec = spec((1, tn), lambda b, i, n: (0, n), resident=kv_w_resident)
    kv_out_spec = pl.BlockSpec((None, tq, tn), lambda b, i, n: (b, i, n))

    kp, vp = pl.pallas_call(
        _kv_proj_kernel,
        grid=(B, S // tq, n_col),
        in_specs=[act_spec, act_spec, w_spec, w_spec, b_spec, b_spec],
        out_specs=[kv_out_spec, kv_out_spec],
        out_shape=(jax.ShapeDtypeStruct((B, S, D), cdt),) * 2,
        compiler_params=pltpu.CompilerParams(
            dimension_semantics=("parallel", "parallel", "arbitrary"),
            vmem_limit_bytes=vmem_limit),
    )(Kc, Vc, wk, wv, bk, bv)

    # ---- 2) Flash attention + fused Q projection + fused W_o --------------
    # NOTE: wq/wo are held fully resident (single-buffered).  For very large
    # d_model on v7x they could be row/column tiled like the K/V weights.
    qx_spec = pl.BlockSpec((None, tq, D), lambda b, qi, ki: (b, qi, 0))
    kv_spec = pl.BlockSpec((None, tk, D), lambda b, qi, ki: (b, ki, 0))
    wq_spec = spec((D, D), lambda b, qi, ki: (0, 0), resident=True)
    bq_spec = spec((1, D), lambda b, qi, ki: (0, 0), resident=True)
    wo_spec = spec((D, D), lambda b, qi, ki: (0, 0), resident=True)
    bo_spec = spec((1, D), lambda b, qi, ki: (0, 0), resident=True)
    o_spec = pl.BlockSpec((None, tq, D), lambda b, qi, ki: (b, qi, 0))

    out = pl.pallas_call(
        functools.partial(_flash_attn_kernel,
                          num_heads=num_heads, d_k=d_k,
                          scale=1.0 / math.sqrt(d_k),
                          compute_dtype=cdt, approx_recip=approx_recip,
                          slab_updates=optimized),
        grid=(B, S // tq, S // tk),
        in_specs=[qx_spec, wq_spec, bq_spec, kv_spec, kv_spec,
                  wo_spec, bo_spec],
        out_specs=o_spec,
        out_shape=jax.ShapeDtypeStruct((B, S, D), out_dtype),
        scratch_shapes=[
            pltpu.VMEM((tq, D), jnp.float32),  # projected, pre-scaled Q
            pltpu.VMEM((tq, D), jnp.float32),  # running max (per-head, replicated)
            pltpu.VMEM((tq, D), jnp.float32),  # running denominator
            pltpu.VMEM((tq, D), jnp.float32),  # running output numerator
        ],
        compiler_params=pltpu.CompilerParams(
            dimension_semantics=("parallel", "parallel", "arbitrary"),
            vmem_limit_bytes=vmem_limit),
    )(Qc, wq, bq, kp, vp, wo, bo)
    # TODO(synk): optional `mask` argument of forward() not implemented
    # (this kernel reproduces the mask=None path).
    return out


def multi_head_attention(Q, K, V, params, num_heads, *,
                         compute_dtype=jnp.float32,
                         q_tile=256, kv_tile=256):
    """Forward pass of MultiHeadAttention (mask=None path).

    compute_dtype: matmul-input dtype (jnp.bfloat16 for the fast path);
    softmax statistics and all accumulation stay in f32.
    """
    try:
        return _mha_impl(Q, K, V, params, num_heads,
                         compute_dtype=compute_dtype,
                         q_tile=q_tile, kv_tile=kv_tile, optimized=True)
    except Exception:  # pragma: no cover
        # Graceful degradation if the installed Pallas/Mosaic rejects one of
        # the perf-only features (pipeline_mode=pl.Buffered(1) or the
        # lane-concatenated slab update); semantics are identical.
        return _mha_impl(Q, K, V, params, num_heads,
                         compute_dtype=compute_dtype,
                         q_tile=q_tile, kv_tile=kv_tile, optimized=False)


def reference_mha(Q, K, V, params, num_heads):
    """Pure-JAX f32 reference mirroring the PyTorch forward (mask=None)."""
    B, S, D = Q.shape
    d_k = D // num_heads

    def lin(x, w, b):
        return x @ w + b

    def split(x):
        return x.reshape(B, S, num_heads, d_k).transpose(0, 2, 1, 3)

    q = split(lin(Q, params["wq"], params["bq"]))
    k = split(lin(K, params["wk"], params["bk"]))
    v = split(lin(V, params["wv"], params["bv"]))
    scores = jnp.einsum("bhqd,bhkd->bhqk", q, k) / math.sqrt(d_k)
    probs = jax.nn.softmax(scores, axis=-1)
    out = jnp.einsum("bhqk,bhkd->bhqd", probs, v)
    out = out.transpose(0, 2, 1, 3).reshape(B, S, D)
    return lin(out, params["wo"], params["bo"])


if __name__ == "__main__":
    B, S, D, H = 2, 8, 32, 4   # batch, seq, d_model, num_heads

    key = jax.random.PRNGKey(0)
    keys = jax.random.split(key, 11)

    scale = 1.0 / math.sqrt(D)
    params = {
        "wq": jax.random.uniform(keys[0], (D, D), jnp.float32, -scale, scale),
        "wk": jax.random.uniform(keys[1], (D, D), jnp.float32, -scale, scale),
        "wv": jax.random.uniform(keys[2], (D, D), jnp.float32, -scale, scale),
        "wo": jax.random.uniform(keys[3], (D, D), jnp.float32, -scale, scale),
        "bq": jax.random.uniform(keys[4], (1, D), jnp.float32, -scale, scale),
        "bk": jax.random.uniform(keys[5], (1, D), jnp.float32, -scale, scale),
        "bv": jax.random.uniform(keys[6], (1, D), jnp.float32, -scale, scale),
        "bo": jax.random.uniform(keys[7], (1, D), jnp.float32, -scale, scale),
    }

    Qx = jax.random.normal(keys[8], (B, S, D), jnp.float32)
    Kx = jax.random.normal(keys[9], (B, S, D), jnp.float32)
    Vx = jax.random.normal(keys[10], (B, S, D), jnp.float32)

    ref = reference_mha(Qx, Kx, Vx, params, num_heads=H)

    # f32 path: tight correctness check against the reference.
    out_f32 = multi_head_attention(Qx, Kx, Vx, params, num_heads=H,
                                   compute_dtype=jnp.float32)
    out_f32 = jax.block_until_ready(out_f32)
    assert out_f32.shape == (B, S, D)
    assert jnp.allclose(out_f32, ref, atol=2e-5, rtol=2e-5), \
        f"f32 max abs err = {jnp.max(jnp.abs(out_f32 - ref))}"

    # bf16 fast path: matmul inputs in bf16, f32 accumulation / softmax stats.
    # (pl.reciprocal(approx=True) is used here; ~1e-3 rel err, well inside the
    # bf16 tolerance.)
    out_bf16 = multi_head_attention(Qx, Kx, Vx, params, num_heads=H,
                                    compute_dtype=jnp.bfloat16)
    out_bf16 = jax.block_until_ready(out_bf16)
    err = jnp.max(jnp.abs(out_bf16.astype(jnp.float32) - ref))
    assert err < 5e-2, f"bf16 max abs err = {err}"

    print("KERNEL_OK")
</pallas_src>

<mosaic_0001>
module attributes {stable_mosaic.version = 11 : i64} {
  func.func @_kv_proj_kernel(%arg0: i32, %arg1: i32, %arg2: i32, %arg3: memref<1x8x32xf32, #tpu.memory_space<vmem>>, %arg4: memref<1x8x32xf32, #tpu.memory_space<vmem>>, %arg5: memref<32x32xf32, #tpu.memory_space<vmem>>, %arg6: memref<32x32xf32, #tpu.memory_space<vmem>>, %arg7: memref<1x32xf32, #tpu.memory_space<vmem>>, %arg8: memref<1x32xf32, #tpu.memory_space<vmem>>, %arg9: memref<1x8x32xf32, #tpu.memory_space<vmem>>, %arg10: memref<1x8x32xf32, #tpu.memory_space<vmem>>) attributes {dimension_semantics = [#tpu.dimension_semantics<parallel>, #tpu.dimension_semantics<parallel>, #tpu.dimension_semantics<arbitrary>], iteration_bounds = array<i64: 2, 1, 1>, scalar_prefetch = 0 : i64, scratch_operands = 0 : i64, tpu.core_type = #tpu.core_type<tc>, window_params = [{transform_indices = @transform_0, window_bounds = array<i64: 1, 8, 32>}, {transform_indices = @transform_1, window_bounds = array<i64: 1, 8, 32>}, {pipeline_mode = #tpu.pipeline_mode<synchronous>, transform_indices = @transform_2, window_bounds = array<i64: 32, 32>}, {pipeline_mode = #tpu.pipeline_mode<synchronous>, transform_indices = @transform_3, window_bounds = array<i64: 32, 32>}, {pipeline_mode = #tpu.pipeline_mode<synchronous>, transform_indices = @transform_4, window_bounds = array<i64: 1, 32>}, {pipeline_mode = #tpu.pipeline_mode<synchronous>, transform_indices = @transform_5, window_bounds = array<i64: 1, 32>}, {transform_indices = @transform_6, window_bounds = array<i64: 1, 8, 32>}, {transform_indices = @transform_7, window_bounds = array<i64: 1, 8, 32>}]} {
    %c0 = arith.constant 0 : index
    %c0_0 = arith.constant 0 : index
    %c0_1 = arith.constant 0 : index
    %0 = vector.load %arg3[%c0, %c0_0, %c0_1] : memref<1x8x32xf32, #tpu.memory_space<vmem>>, vector<1x8x32xf32>
    %1 = vector.shape_cast %0 : vector<1x8x32xf32> to vector<8x32xf32>
    %c0_2 = arith.constant 0 : index
    %c0_3 = arith.constant 0 : index
    %2 = vector.load %arg5[%c0_2, %c0_3] : memref<32x32xf32, #tpu.memory_space<vmem>>, vector<32x32xf32>
    %cst = arith.constant dense<0.000000e+00> : vector<8x32xf32>
    %3 = tpu.matmul %1, %2, %cst {dimension_numbers = #tpu.dot_dimension_numbers<[1], [0], [0], [1], [0, 0, 1, 1], [], []>} : vector<8x32xf32>, vector<32x32xf32>, vector<8x32xf32> -> vector<8x32xf32>
    %c0_4 = arith.constant 0 : index
    %c0_5 = arith.constant 0 : index
    %4 = vector.load %arg7[%c0_4, %c0_5] : memref<1x32xf32, #tpu.memory_space<vmem>>, vector<1x32xf32>
    %5 = vector.broadcast %4 : vector<1x32xf32> to vector<8x32xf32>
    %6 = arith.addf %3, %5 : vector<8x32xf32>
    %c0_6 = arith.constant 0 : index
    %c0_7 = arith.constant 0 : index
    %c0_8 = arith.constant 0 : index
    %7 = vector.load %arg4[%c0_6, %c0_7, %c0_8] : memref<1x8x32xf32, #tpu.memory_space<vmem>>, vector<1x8x32xf32>
    %8 = vector.shape_cast %7 : vector<1x8x32xf32> to vector<8x32xf32>
    %c0_9 = arith.constant 0 : index
    %c0_10 = arith.constant 0 : index
    %9 = vector.load %arg6[%c0_9, %c0_10] : memref<32x32xf32, #tpu.memory_space<vmem>>, vector<32x32xf32>
    %cst_11 = arith.constant dense<0.000000e+00> : vector<8x32xf32>
    %10 = tpu.matmul %8, %9, %cst_11 {dimension_numbers = #tpu.dot_dimension_numbers<[1], [0], [0], [1], [0, 0, 1, 1], [], []>} : vector<8x32xf32>, vector<32x32xf32>, vector<8x32xf32> -> vector<8x32xf32>
    %c0_12 = arith.constant 0 : index
    %c0_13 = arith.constant 0 : index
    %11 = vector.load %arg8[%c0_12, %c0_13] : memref<1x32xf32, #tpu.memory_space<vmem>>, vector<1x32xf32>
    %12 = vector.broadcast %11 : vector<1x32xf32> to vector<8x32xf32>
    %13 = arith.addf %10, %12 : vector<8x32xf32>
    %c0_14 = arith.constant 0 : index
    %c0_15 = arith.constant 0 : index
    %c0_16 = arith.constant 0 : index
    %14 = vector.load %arg9[%c0_14, %c0_15, %c0_16] : memref<1x8x32xf32, #tpu.memory_space<vmem>>, vector<1x8x32xf32>
    %15 = vector.shape_cast %14 : vector<1x8x32xf32> to vector<8x32xf32>
    %16 = vector.shape_cast %6 : vector<8x32xf32> to vector<1x8x32xf32>
    tpu.vector_store %arg9[%c0_14, %c0_15, %c0_16], %16 {strides = array<i32>} : memref<1x8x32xf32, #tpu.memory_space<vmem>>, vector<1x8x32xf32>,
    %c0_17 = arith.constant 0 : index
    %c0_18 = arith.constant 0 : index
    %c0_19 = arith.constant 0 : index
    %17 = vector.load %arg10[%c0_17, %c0_18, %c0_19] : memref<1x8x32xf32, #tpu.memory_space<vmem>>, vector<1x8x32xf32>
    %18 = vector.shape_cast %17 : vector<1x8x32xf32> to vector<8x32xf32>
    %19 = vector.shape_cast %13 : vector<8x32xf32> to vector<1x8x32xf32>
    tpu.vector_store %arg10[%c0_17, %c0_18, %c0_19], %19 {strides = array<i32>} : memref<1x8x32xf32, #tpu.memory_space<vmem>>, vector<1x8x32xf32>,
    return
  }
  func.func @transform_0(%arg0: i32, %arg1: i32, %arg2: i32) -> (i32, i32, i32) {
    %c0_i32 = arith.constant 0 : i32
    %c0_i32_0 = arith.constant 0 : i32
    return %arg0, %arg1, %c0_i32 : i32, i32, i32
  }
  func.func @transform_1(%arg0: i32, %arg1: i32, %arg2: i32) -> (i32, i32, i32) {
    %c0_i32 = arith.constant 0 : i32
    %c0_i32_0 = arith.constant 0 : i32
    return %arg0, %arg1, %c0_i32 : i32, i32, i32
  }
  func.func @transform_2(%arg0: i32, %arg1: i32, %arg2: i32) -> (i32, i32) {
    %c0_i32 = arith.constant 0 : i32
    %c0_i32_0 = arith.constant 0 : i32
    return %c0_i32, %arg2 : i32, i32
  }
  func.func @transform_3(%arg0: i32, %arg1: i32, %arg2: i32) -> (i32, i32) {
    %c0_i32 = arith.constant 0 : i32
    %c0_i32_0 = arith.constant 0 : i32
    return %c0_i32, %arg2 : i32, i32
  }
  func.func @transform_4(%arg0: i32, %arg1: i32, %arg2: i32) -> (i32, i32) {
    %c0_i32 = arith.constant 0 : i32
    %c0_i32_0 = arith.constant 0 : i32
    return %c0_i32, %arg2 : i32, i32
  }
  func.func @transform_5(%arg0: i32, %arg1: i32, %arg2: i32) -> (i32, i32) {
    %c0_i32 = arith.constant 0 : i32
    %c0_i32_0 = arith.constant 0 : i32
    return %c0_i32, %arg2 : i32, i32
  }
  func.func @transform_6(%arg0: i32, %arg1: i32, %arg2: i32) -> (i32, i32, i32) {
    %c0_i32 = arith.constant 0 : i32
    return %arg0, %arg1, %arg2 : i32, i32, i32
  }
  func.func @transform_7(%arg0: i32, %arg1: i32, %arg2: i32) -> (i32, i32, i32) {
    %c0_i32 = arith.constant 0 : i32
    return %arg0, %arg1, %arg2 : i32, i32, i32
  }
}

module attributes {stable_mosaic.version = 11 : i64} {
  func.func @_kv_proj_kernel(%arg0: i32, %arg1: i32, %arg2: i32, %arg3: memref<1x8x32xf32, #tpu.memory_space<vmem>>, %arg4: memref<1x8x32xf32, #tpu.memory_space<vmem>>, %arg5: memref<32x32xf32, #tpu.memory_space<vmem>>, %arg6: memref<32x32xf32, #tpu.memory_space<vmem>>, %arg7: memref<1x32xf32, #tpu.memory_space<vmem>>, %arg8: memref<1x32xf32, #tpu.memory_space<vmem>>, %arg9: memref<1x8x32xf32, #tpu.memory_space<vmem>>, %arg10: memref<1x8x32xf32, #tpu.memory_space<vmem>>) attributes {dimension_semantics = [#tpu.dimension_semantics<parallel>, #tpu.dimension_semantics<parallel>, #tpu.dimension_semantics<arbitrary>], iteration_bounds = array<i64: 2, 1, 1>, scalar_prefetch = 0 : i64, scratch_operands = 0 : i64, tpu.core_type = #tpu.core_type<tc>, window_params = [{transform_indices = @transform_0, window_bounds = array<i64: 1, 8, 32>}, {transform_indices = @transform_1, window_bounds = array<i64: 1, 8, 32>}, {transform_indices = @transform_2, window_bounds = array<i64: 32, 32>}, {transform_indices = @transform_3, window_bounds = array<i64: 32, 32>}, {transform_indices = @transform_4, window_bounds = array<i64: 1, 32>}, {transform_indices = @transform_5, window_bounds = array<i64: 1, 32>}, {transform_indices = @transform_6, window_bounds = array<i64: 1, 8, 32>}, {transform_indices = @transform_7, window_bounds = array<i64: 1, 8, 32>}]} {
    %c0 = arith.constant 0 : index
    %c0_0 = arith.constant 0 : index
    %c0_1 = arith.constant 0 : index
    %0 = vector.load %arg3[%c0, %c0_0, %c0_1] : memref<1x8x32xf32, #tpu.memory_space<vmem>>, vector<1x8x32xf32>
    %1 = vector.shape_cast %0 : vector<1x8x32xf32> to vector<8x32xf32>
    %c0_2 = arith.constant 0 : index
    %c0_3 = arith.constant 0 : index
    %2 = vector.load %arg5[%c0_2, %c0_3] : memref<32x32xf32, #tpu.memory_space<vmem>>, vector<32x32xf32>
    %cst = arith.constant dense<0.000000e+00> : vector<8x32xf32>
    %3 = tpu.matmul %1, %2, %cst {dimension_numbers = #tpu.dot_dimension_numbers<[1], [0], [0], [1], [0, 0, 1, 1], [], []>} : vector<8x32xf32>, vector<32x32xf32>, vector<8x32xf32> -> vector<8x32xf32>
    %c0_4 = arith.constant 0 : index
    %c0_5 = arith.constant 0 : index
    %4 = vector.load %arg7[%c0_4, %c0_5] : memref<1x32xf32, #tpu.memory_space<vmem>>, vector<1x32xf32>
    %5 = vector.broadcast %4 : vector<1x32xf32> to vector<8x32xf32>
    %6 = arith.addf %3, %5 : vector<8x32xf32>
    %c0_6 = arith.constant 0 : index
    %c0_7 = arith.constant 0 : index
    %c0_8 = arith.constant 0 : index
    %7 = vector.load %arg4[%c0_6, %c0_7, %c0_8] : memref<1x8x32xf32, #tpu.memory_space<vmem>>, vector<1x8x32xf32>
    %8 = vector.shape_cast %7 : vector<1x8x32xf32> to vector<8x32xf32>
    %c0_9 = arith.constant 0 : index
    %c0_10 = arith.constant 0 : index
    %9 = vector.load %arg6[%c0_9, %c0_10] : memref<32x32xf32, #tpu.memory_space<vmem>>, vector<32x32xf32>
    %cst_11 = arith.constant dense<0.000000e+00> : vector<8x32xf32>
    %10 = tpu.matmul %8, %9, %cst_11 {dimension_numbers = #tpu.dot_dimension_numbers<[1], [0], [0], [1], [0, 0, 1, 1], [], []>} : vector<8x32xf32>, vector<32x32xf32>, vector<8x32xf32> -> vector<8x32xf32>
    %c0_12 = arith.constant 0 : index
    %c0_13 = arith.constant 0 : index
    %11 = vector.load %arg8[%c0_12, %c0_13] : memref<1x32xf32, #tpu.memory_space<vmem>>, vector<1x32xf32>
    %12 = vector.broadcast %11 : vector<1x32xf32> to vector<8x32xf32>
    %13 = arith.addf %10, %12 : vector<8x32xf32>
    %c0_14 = arith.constant 0 : index
    %c0_15 = arith.constant 0 : index
    %c0_16 = arith.constant 0 : index
    %14 = vector.load %arg9[%c0_14, %c0_15, %c0_16] : memref<1x8x32xf32, #tpu.memory_space<vmem>>, vector<1x8x32xf32>
    %15 = vector.shape_cast %14 : vector<1x8x32xf32> to vector<8x32xf32>
    %16 = vector.shape_cast %6 : vector<8x32xf32> to vector<1x8x32xf32>
    tpu.vector_store %arg9[%c0_14, %c0_15, %c0_16], %16 {strides = array<i32>} : memref<1x8x32xf32, #tpu.memory_space<vmem>>, vector<1x8x32xf32>,
    %c0_17 = arith.constant 0 : index
    %c0_18 = arith.constant 0 : index
    %c0_19 = arith.constant 0 : index
    %17 = vector.load %arg10[%c0_17, %c0_18, %c0_19] : memref<1x8x32xf32, #tpu.memory_space<vmem>>, vector<1x8x32xf32>
    %18 = vector.shape_cast %17 : vector<1x8x32xf32> to vector<8x32xf32>
    %19 = vector.shape_cast %13 : vector<8x32xf32> to vector<1x8x32xf32>
    tpu.vector_store %arg10[%c0_17, %c0_18, %c0_19], %19 {strides = array<i32>} : memref<1x8x32xf32, #tpu.memory_space<vmem>>, vector<1x8x32xf32>,
    return
  }
  func.func @transform_0(%arg0: i32, %arg1: i32, %arg2: i32) -> (i32, i32, i32) {
    %c0_i32 = arith.constant 0 : i32
    %c0_i32_0 = arith.constant 0 : i32
    return %arg0, %arg1, %c0_i32 : i32, i32, i32
  }
  func.func @transform_1(%arg0: i32, %arg1: i32, %arg2: i32) -> (i32, i32, i32) {
    %c0_i32 = arith.constant 0 : i32
    %c0_i32_0 = arith.constant 0 : i32
    return %arg0, %arg1, %c0_i32 : i32, i32, i32
  }
  func.func @transform_2(%arg0: i32, %arg1: i32, %arg2: i32) -> (i32, i32) {
    %c0_i32 = arith.constant 0 : i32
    %c0_i32_0 = arith.constant 0 : i32
    return %c0_i32, %arg2 : i32, i32
  }
  func.func @transform_3(%arg0: i32, %arg1: i32, %arg2: i32) -> (i32, i32) {
    %c0_i32 = arith.constant 0 : i32
    %c0_i32_0 = arith.constant 0 : i32
    return %c0_i32, %arg2 : i32, i32
  }
  func.func @transform_4(%arg0: i32, %arg1: i32, %arg2: i32) -> (i32, i32) {
    %c0_i32 = arith.constant 0 : i32
    %c0_i32_0 = arith.constant 0 : i32
    return %c0_i32, %arg2 : i32, i32
  }
  func.func @transform_5(%arg0: i32, %arg1: i32, %arg2: i32) -> (i32, i32) {
    %c0_i32 = arith.constant 0 : i32
    %c0_i32_0 = arith.constant 0 : i32
    return %c0_i32, %arg2 : i32, i32
  }
  func.func @transform_6(%arg0: i32, %arg1: i32, %arg2: i32) -> (i32, i32, i32) {
    %c0_i32 = arith.constant 0 : i32
    return %arg0, %arg1, %arg2 : i32, i32, i32
  }
  func.func @transform_7(%arg0: i32, %arg1: i32, %arg2: i32) -> (i32, i32, i32) {
    %c0_i32 = arith.constant 0 : i32
    return %arg0, %arg1, %arg2 : i32, i32, i32
  }
}

</mosaic_0001>

<bundles_post_ra>
// kernel: tpu_custom_call.1
= control target key start
LH: loop header
LB: loop body
LE: loop exit
PB: predicated region body
PF: predicated region fallthrough
CT: control target
= control target key end

     0   :  { %s1367_s0 = inlined_call_operand.hbm [shape: f32[2,8,32], index: 0, kind: input, shape index: {}]   ;;  %s1368_s1 = inlined_call_operand.hbm [shape: f32[2,8,32], index: 1, kind: input, shape index: {}]   ;;  %s1369_s2 = inlined_call_operand.hbm [shape: f32[32,32], index: 2, kind: input, shape index: {}]   ;;  %s1370_s3 = inlined_call_operand.hbm [shape: f32[32,32], index: 3, kind: input, shape index: {}]   ;;  %s1371_s4 = inlined_call_operand.vmem [shape: f32[1,32], index: 4, kind: input, shape index: {}]   ;;  %s1372_s5 = inlined_call_operand.vmem [shape: f32[1,32], index: 5, kind: input, shape index: {}]   ;;  %s1373_s6 = inlined_call_operand.hbm [shape: f32[2,8,32], index: 6, kind: output, shape index: {0}]   ;;  %s1374_s7 = inlined_call_operand.hbm [shape: f32[2,8,32], index: 7, kind: output, shape index: {1}]  }
   0x1   :  { %1380 = sst [smem:[#allocation25_spill]] %s1369_s2 }
   0x2   :  { %1381 = sst [smem:[#allocation26_spill]] %s1370_s3 }
   0x3   :  { %13 = vsyncpa [#allocation3], 0 }
   0x4   :  { %15 = vsyncpa [#allocation3 + $0x1], 0 }
   0x5   :  { %16 = vsyncpa [#allocation6], 0 }
   0x6   :  { %18 = vsyncpa [#allocation6 + $0x1], 0 }
   0x7   :  { %19 = vsyncpa [#allocation9], 0 }
   0x8   :  { %20 = vsyncpa [#allocation4], 0 }
   0x9   :  { %22 = vsyncpa [#allocation4 + $0x1], 0 }
   0xa   :  { %23 = vsyncpa [#allocation12], 0 }
   0xb   :  { %25 = vsyncpa [#allocation12 + $0x1], 0  ;;  %s1166_s24 = smov 0   ;;  %s1168_s25 = smov 0  }
   0xc   :  { %s1170_s26 = smov 0   ;;  %s1172_s27 = smov 0  }
   0xd   :  { %s1174_s28 = smov 0   ;;  %s1176_s29 = smov 0  }
   0xe LB: > { %1382 = sst [smem:[#allocation19_spill]] %s1100_s24  ;;  %s1197_s30 = sadd.s32 4294967295, %s1120_s29   ;;  %s1120_s29 = sphi %s1176_s29, %s31_s29   ;;  %s1116_s28 = sphi %s1174_s28, %s1400_s28   ;;  %s1112_s27 = sphi %s1172_s27, %s1399_s27   ;;  %s1108_s26 = sphi %s1170_s26, %s1398_s26   ;;  %s1104_s25 = sphi %s1168_s25, %s1402_s25   ;;  %s1100_s24 = sphi %s1166_s24, %s1401_s24  }
   0xf   : > { %1383 = sst [smem:[#allocation20_spill]] %s1108_s26  ;;  %p752_p0 = scmp.ge.s32.totalorder %s1120_s29, 1 }
  0x10   : > { %1384 = sst [smem:[#allocation21_spill]] %s1116_s28  ;;  %p73_p1 = scmp.eq.s32.totalorder %s1197_s30, 0 }
  0x11   : > { %p275_p2 = scmp.lt.s32.totalorder %s1120_s29, 3  ;;  %s1385_s2 = sld [smem:[#allocation25_spill]] }
  0x12   : > { %s1122_s12 = smov [#allocation7]   ;;  %p757_p6 = scmp.ge.s32.totalorder %s1120_s29, 2 }
  0x13   : > { %p1205_p3 = pnand %p752_p0, %p275_p2  ;;  %s290_s13 = sshll.u32 %s1122_s12, 4  ;;  %s291_s13 = int_to_ptr.vmem [resolvable:$true] %s290_s13 }
  0x14   : > { %s1387_s3 = sld [smem:[#allocation26_spill]]  ;;  %s1123_s17 = smov 128  }
  0x15   : > { %p793_p4 = pneg %p1205_p3  ;;  %s1124_s18 = smov 8  }
  0x16   : > { %s1125_s19 = smov [#allocation8]   ;;  %s751_s21 = sadd.s32 4294967294, %s1120_s29  }
  0x17   : > { %s288_s10 = sshll.u32 %s1385_s2, 4  ;;  %p794_p5 = pnand %p793_p4, %p73_p1  ;;  %s289_s10 = int_to_ptr.hbm [resolvable:$true] %s288_s10 }
  0x18   : > { %s306_s20 = sshll.u32 %s1125_s19, 4  ;;  %s50_s22 = sadd.s32 1, %s1116_s28  ;;  %s307_s20 = int_to_ptr.vmem [resolvable:$true] %s306_s20 }
  0x19   : > { %796 = dma.hbm_to_vmem [thread:$0]  (!%p794_p5), %s289_s10, 512, %s291_s13, [#allocation6], %s1123_s17, %s1123_s17, %s1124_s18  }
  0x1a   : > { %s304_s16 = sshll.u32 %s1387_s3, 4  ;;  %p52_p7 = scmp.ge.s32.totalorder %s50_s22, 2  ;;  %s305_s16 = int_to_ptr.hbm [resolvable:$true] %s304_s16 }
  0x1b   : > { %799 = dma.hbm_to_vmem [thread:$0]  (!%p794_p5), %s305_s16, 512, %s307_s20, [#allocation9], %s1123_s17, %s1123_s17, %s1124_s18  }
  0x1c   : > { %s59_s23 = sadd.s32 1, %s1108_s26  ;;  %p66_p8 = scmp.ne.s32.totalorder %s1108_s26, %s1104_s25 }
  0x1d   : > { %p67_p9 = scmp.eq.s32.totalorder %s1120_s29, 0  ;;  %s1404_s22 = smov (%p52_p7, %s50_s22), 0 }
  0x1e   : > { %1388 = sst [smem:[#allocation22_spill]] %s1404_s22  ;;  %p72_p11 = scmp.ne.s32.totalorder %s1104_s25, %s1100_s24 }
  0x1f   : > { %p1225_p10 = por %p67_p9, %p66_p8  ;;  %s54_s9 = ssub.s32 %s1116_s28, %s1404_s22 }
  0x20   : > { %p232_p12 = scmp.eq.s32.totalorder %s1197_s30, 1  ;;  %p57_p13 = scmp.eq.s32.totalorder %s54_s9, 0 }
  0x21   : > { %p1236_p0 = por %p73_p1, %p72_p11  ;;  %p238_p4 = scmp.eq.s32.totalorder %s751_s21, 1 }
  0x22   : > { %p1240_p2 = por %p232_p12, %p66_p8  ;;  %p816_p7 = scmp.lt.s32.totalorder %s1120_s29, 2 }
  0x23   : > { %s1245_s13 = scalar_select %p57_p13, %s1108_s26, %s59_s23  }
  0x24   : > { %p1247_p5 = por %p238_p4, %p72_p11  ;;  %s332_s15 = sand.u32 1, %s1108_s26  }
  0x25   : > { %1392 = sst [smem:[#allocation23_spill]] %s1245_s13  ;;  %s759_s16 = sshll.u32 %s1116_s28, 3 }
  0x26   : > { %s1393_s14 = scalar_select %p1247_p5, 1, 0 }
  0x27   : > { %s758_s17 = sshll.u32 %s332_s15, 3  ;;  %s341_s20 = scalar_lea.hbm %s1367_s0, %s759_s16 }
  0x28   : > { %1394 = sst [smem:[#allocation24_spill]] %s1393_s14  ;;  %s343_s9 = sshll.u32 %s341_s20, 4  ;;  %s344_s9 = int_to_ptr.hbm [resolvable:$true] %s343_s9 }
  0x29   : > { %s336_s2 = scalar_lea.vmem [#allocation2], %s758_s17  ;;  %p801_p8 = pnand %p816_p7, %p1225_p10 }
  0x2a   : > { %s345_s3 = sshll.u32 %s336_s2, 4  ;;  %s361_s22 = scalar_lea.hbm %s1368_s1, %s759_s16  ;;  %s346_s3 = int_to_ptr.vmem [resolvable:$true] %s345_s3 }
  0x2b   : > { %s352_s13 = sand.u32 1, %s1120_s29   ;;  %s333_s14 = scalar_lea.sflag [#allocation3], %s332_s15 }
  0x2c   : > { %803 = dma.hbm_to_vmem [thread:$0]  (!%p801_p8), %s344_s9, 128, %s346_s3, %s333_s14  }
  0x2d   : > { %s363_s28 = sshll.u32 %s361_s22, 4  ;;  %s356_s26 = scalar_lea.vmem [#allocation5], %s758_s17  ;;  %s364_s28 = int_to_ptr.hbm [resolvable:$true] %s363_s28 }
  0x2e   : > { %s365_s24 = sshll.u32 %s356_s26, 4  ;;  %s353_s18 = scalar_lea.sflag [#allocation6], %s352_s13  ;;  %s366_s24 = int_to_ptr.vmem [resolvable:$true] %s365_s24 }
  0x2f   : > { %806 = dma.hbm_to_vmem [thread:$0]  (!%p801_p8), %s364_s28, 128, %s366_s24, %s353_s18  }
  0x30   : > { %374 = sbr.rel (%p1205_p3) target bundleno = 212 (0xd4), region = 44  ;;  %s1266_s2 = sand.u32 (!%p1205_p3), 1, %s1104_s25  }
  0x31   : > { %s1269_s8 = sshll.u32 (!%p1205_p3), %s1266_s2, 3  ;;  %s377_s3 = scalar_lea.sflag (!%p1205_p3), [#allocation3], %s1266_s2 }
  0x32   : > { %s380_s22 = scalar_lea.vmem (!%p1205_p3), [#allocation2], %s1269_s8 }
  0x35   : > { %1075 = dma.done.wait (%p1236_p0), %s377_s3, 128  }
  0x36   : > { %1077 = vsyncadd (%p1236_p0), %s377_s3, 4294967168  ;;  %s386_s24 = sand.u32 1, %s1197_s30   ;;  %s390_s28 = scalar_lea.vmem [#allocation5], %s1269_s8 }
  0x37   : > { %s387_s26 = scalar_lea.sflag [#allocation6], %s386_s24 }
  0x38   : > { %1079 = dma.done.wait (%p1236_p0), %s387_s26, 128  }
  0x39   : > { %1081 = vsyncadd (%p1236_p0), %s387_s26, 4294967168 }
  0x3a   : > { %1083 = dma.done.wait (%p73_p1), [#allocation6], 512  }
  0x3b   : > { %1085 = vsyncadd (%p73_p1), [#allocation6], 4294966784 }
  0x3c   : > { %1087 = dma.done.wait (%p73_p1), [#allocation9], 512  }
  0x3d   : > { %1089 = vsyncadd (%p73_p1), [#allocation9], 4294966784  ;;  %v458_v0 = vld [vmem:[#allocation7 + $0x18] sm:$0xff]  ;;  %v457_v2 = vld [vmem:[#allocation7 + $0x10] sm:$0xff]  ;;  %vm463_vm0 = vcmask 261120   ;;  %s773_s30 = sshll.u32 %s1112_s27, 3 }
  0x3e   : > { %v491_v1 = vld [vmem:[#allocation8 + $0x18] sm:$0xff]  ;;  %479 = vmatpush.msra.mxu0 %v458_v0  ;;  %v490_v3 = vld [vmem:[#allocation8 + $0x10] sm:$0xff]  ;;  %v456_v4 = vld [vmem:[#allocation7 + $0x8] sm:$0xff]  ;;  %s539_s13 = scalar_lea.hbm %s1373_s6, %s773_s30  ;;  %s555_s16 = scalar_lea.hbm %s1374_s7, %s773_s30 }
  0x3f   : > { %511 = vmatpush.msra.mxu1 %v491_v1  ;;  %v489_v5 = vld [vmem:[#allocation8 + $0x8] sm:$0xff]  ;;  %v455_v6 = vld [vmem:[#allocation7] sm:$0xff]  ;;  %v487_v9 = vld [vmem:[%s390_s28] sm:$0xff]  ;;  %s440_s21 = scalar_lea.vmem [#allocation10], %s1269_s8  ;;  %s543_s27 = sshll.u32 %s539_s13, 4  ;;  %s544_s27 = int_to_ptr.hbm [resolvable:$true] %s543_s27 }
  0x40   : > { %480 = vmatpush.msra.mxu0 %v457_v2  ;;  %v488_v7 = vld [vmem:[#allocation8] sm:$0xff]  ;;  %s1307_s23 = sshll.u32 %s440_s21, 4  ;;  %s447_s18 = scalar_lea.vmem [#allocation11], %s1269_s8  ;;  %s542_s23 = int_to_ptr.vmem [resolvable:$true] %s1307_s23 }
  0x41   : > { %512 = vmatpush.msra.mxu1 %v490_v3  ;;  %v454_v8 = vld [vmem:[%s380_s22] sm:$0xff]  ;;  %s1310_s3 = sshll.u32 %s447_s18, 4  ;;  %s559_s22 = sshll.u32 %s555_s16, 4  ;;  %s558_s3 = int_to_ptr.vmem [resolvable:$true] %s1310_s3  ;;  %s1314_s22 = int_to_ptr.hbm [resolvable:$true] %s559_s22 }
  0x42   : > { %481 = vmatpush.msra.mxu0 %v456_v4  ;;  %v872_v10 = vld [vmem:[%s1371_s4] ss:$0 sm:$0xff]  ;;  %s522_s24 = scalar_lea.sflag [#allocation4], %s1266_s2  ;;  %s1008_s26 = sshra.s32 %s544_s27, 4  ;;  %s1009_s26 = int_to_ptr.hbm [resolvable:$true] %s1008_s26 }
  0x43   : > { %513 = vmatpush.msra.mxu1 %v489_v5  ;;  %v873_v11 = vld [vmem:[%s1372_s5] ss:$0 sm:$0xff]  ;;  %s1010_s8 = scalar_lea.hbm %s1009_s26, 8  ;;  %s1014_s11 = scalar_lea.hbm %s1373_s6, 16 }
  0x44   : > { %482 = vmatpush.msra.mxu0 %v455_v6  ;;  %p1011_p1 = scmp.ne.s32.totalorder %s1009_s26, %s1010_s8  ;;  %p1015_p10 = scmp.lt.s32.totalorder %s1009_s26, %s1373_s6 }
  0x45   : > { %514 = vmatpush.msra.mxu1 %v488_v7  ;;  %769 = vmatmul.msk.f32.vlgmr.msra.gmra.mxu0 %vm463_vm0, %v454_v8  ;;  %p1016_p11 = scmp.lt.s32.totalorder %s1014_s11, %s1010_s8 }
  0x46   : > { %770 = vmatmul.msk.f32.vlgmr.msra.gmra.mxu1 %vm463_vm0, %v487_v9  ;;  %p1012_p3 = pnand %p1011_p1, %p1240_p2 }
  0x47   : > { %p1017_p12 = por %p1016_p11, %p1015_p10 }
  0x48   : > { %p1013_p9 = pneg %p1012_p3 }
  0x4a   : > { %p1018_p13 = pnand %p1017_p12, %p1013_p9 }
  0xc2   : > { %v484_v12 = vpop.f32.mrf.mxu0 }
  0xc3   : > { %v516_v13 = vpop.f32.mrf.mxu1  ;;  %v485_v14 = vadd.f32 %v872_v10, %v484_v12 }
  0xc4   : > { %v517_v15 = vadd.f32 %v873_v11, %v516_v13 }
  0xc5   : > { %519 = vst.msk [vmem:[%s440_s21] sm:$0xff] %vm463_vm0, %v485_v14 }
  0xc6   : > { %1021 = shalt.err (!%p1018_p13)
}
  0xc7   : > { %789 = dma.vmem_to_hbm [thread:$0]  (%p1240_p2), %s542_s23, 128, %s544_s27, %s522_s24   ;;  %520 = vst.msk [vmem:[%s447_s18] sm:$0xff] %vm463_vm0, %v517_v15 }
  0xc8   : > { %s527_s14 = scalar_lea.sflag [#allocation12], %s1266_s2  ;;  %s1036_s15 = sshra.s32 %s1314_s22, 4  ;;  %s1037_s15 = int_to_ptr.hbm [resolvable:$true] %s1036_s15 }
  0xc9   : > { %s1038_s16 = scalar_lea.hbm %s1037_s15, 8  ;;  %s1042_s20 = scalar_lea.hbm %s1374_s7, 16 }
  0xca   : > { %p1039_p0 = scmp.ne.s32.totalorder %s1037_s15, %s1038_s16  ;;  %p1043_p8 = scmp.lt.s32.totalorder %s1037_s15, %s1374_s7 }
  0xcb   : > { %p1044_p1 = scmp.lt.s32.totalorder %s1042_s20, %s1038_s16 }
  0xcc   : > { %p1040_p4 = pnand %p1039_p0, %p1240_p2 }
  0xcd   : > { %p1045_p3 = por %p1044_p1, %p1043_p8 }
  0xce   : > { %p1041_p7 = pneg %p1040_p4 }
  0xd0   : > { %p1046_p9 = pnand %p1045_p3, %p1041_p7 }
  0xd2   : > { %1049 = shalt.err (!%p1046_p9)
}
  0xd3   : > { %790 = dma.vmem_to_hbm [thread:$0]  (%p1240_p2), %s558_s3, 128, %s1314_s22, %s527_s14  }
  0xd4 PF: > { %s1395_s2 = sld [smem:[#allocation19_spill]]  ;;  %p808_p10 = pnand %p757_p6, %p1247_p5 }
  0xd6   : > { %p809_p11 = pneg %p808_p10 }
  0xda   : > { %s571_s27 = sand.u32 1, %s1395_s2  }
  0xdb   : > { %s572_s18 = scalar_lea.sflag [#allocation4], %s571_s27 }
  0xdc   : > { %1091 = dma.done.wait (%p809_p11), %s572_s18, 128  }
  0xdd   : > { %1093 = vsyncadd (%p809_p11), %s572_s18, 4294967168  ;;  %s582_s24 = scalar_lea.sflag [#allocation12], %s571_s27 }
  0xde   : > { %1095 = dma.done.wait (%p809_p11), %s582_s24, 128  }
  0xdf   : > { %1097 = vsyncadd (%p809_p11), %s582_s24, 4294967168  ;;  %s31_s29 = sadd.s32 1, %s1120_s29   ;;  %s1397_s12 = sld [smem:[#allocation20_spill]] }
  0xe0   : > { %p28_p12 = scmp.ge.s32.totalorder %s31_s29, 4   ;;  %s1398_s26 = sld [smem:[#allocation23_spill]] }
  0xe1   : > { %s1399_s27 = sld [smem:[#allocation21_spill]]  ;;  %s1401_s24 = smov %s1104_s25 }
  0xe2   : > { %s1400_s28 = sld [smem:[#allocation22_spill]]  ;;  %30 = sbr.rel (!%p28_p12) target bundleno = 14 (0xe), region = 135 }
  0xe5   : > { %s1402_s25 = smov %s1397_s12 }
  0xe7   :  { %588 = vsyncpa [#allocation3], 1 }
  0xe8   :  { %590 = vsyncpa [#allocation3 + $0x1], 1 }
  0xe9   :  { %591 = vsyncpa [#allocation6], 1 }
  0xea   :  { %593 = vsyncpa [#allocation6 + $0x1], 1 }
  0xeb   :  { %594 = vsyncpa [#allocation9], 1 }
  0xec   :  { %595 = vsyncpa [#allocation4], 1 }
  0xed   :  { %597 = vsyncpa [#allocation4 + $0x1], 1 }
  0xee   :  { %598 = vsyncpa [#allocation12], 1 }
  0xef   :  { %600 = vsyncpa [#allocation12 + $0x1], 1 }

// kernel: tpu_custom_call.1
= control target key start
LH: loop header
LB: loop body
LE: loop exit
PB: predicated region body
PF: predicated region fallthrough
CT: control target
= control target key end

     0   :  { %s1367_s0 = inlined_call_operand.hbm [shape: f32[2,8,32], index: 0, kind: input, shape index: {}]   ;;  %s1368_s1 = inlined_call_operand.hbm [shape: f32[2,8,32], index: 1, kind: input, shape index: {}]   ;;  %s1369_s2 = inlined_call_operand.hbm [shape: f32[32,32], index: 2, kind: input, shape index: {}]   ;;  %s1370_s3 = inlined_call_operand.hbm [shape: f32[32,32], index: 3, kind: input, shape index: {}]   ;;  %s1371_s4 = inlined_call_operand.vmem [shape: f32[1,32], index: 4, kind: input, shape index: {}]   ;;  %s1372_s5 = inlined_call_operand.vmem [shape: f32[1,32], index: 5, kind: input, shape index: {}]   ;;  %s1373_s6 = inlined_call_operand.hbm [shape: f32[2,8,32], index: 6, kind: output, shape index: {0}]   ;;  %s1374_s7 = inlined_call_operand.hbm [shape: f32[2,8,32], index: 7, kind: output, shape index: {1}]  }
   0x1   :  { %1380 = sst [smem:[#allocation25_spill]] %s1369_s2 }
   0x2   :  { %1381 = sst [smem:[#allocation26_spill]] %s1370_s3 }
   0x3   :  { %13 = vsyncpa [#allocation3], 0 }
   0x4   :  { %15 = vsyncpa [#allocation3 + $0x1], 0 }
   0x5   :  { %16 = vsyncpa [#allocation6], 0 }
   0x6   :  { %18 = vsyncpa [#allocation6 + $0x1], 0 }
   0x7   :  { %19 = vsyncpa [#allocation9], 0 }
   0x8   :  { %20 = vsyncpa [#allocation4], 0 }
   0x9   :  { %22 = vsyncpa [#allocation4 + $0x1], 0 }
   0xa   :  { %23 = vsyncpa [#allocation12], 0 }
   0xb   :  { %25 = vsyncpa [#allocation12 + $0x1], 0  ;;  %s1166_s24 = smov 0   ;;  %s1168_s25 = smov 0  }
   0xc   :  { %s1170_s26 = smov 0   ;;  %s1172_s27 = smov 0  }
   0xd   :  { %s1174_s28 = smov 0   ;;  %s1176_s29 = smov 0  }
   0xe LB: > { %1382 = sst [smem:[#allocation19_spill]] %s1100_s24  ;;  %s1197_s30 = sadd.s32 4294967295, %s1120_s29   ;;  %s1120_s29 = sphi %s1176_s29, %s31_s29   ;;  %s1116_s28 = sphi %s1174_s28, %s1400_s28   ;;  %s1112_s27 = sphi %s1172_s27, %s1399_s27   ;;  %s1108_s26 = sphi %s1170_s26, %s1398_s26   ;;  %s1104_s25 = sphi %s1168_s25, %s1402_s25   ;;  %s1100_s24 = sphi %s1166_s24, %s1401_s24  }
   0xf   : > { %1383 = sst [smem:[#allocation20_spill]] %s1108_s26  ;;  %p752_p0 = scmp.ge.s32.totalorder %s1120_s29, 1 }
  0x10   : > { %1384 = sst [smem:[#allocation21_spill]] %s1116_s28  ;;  %p73_p1 = scmp.eq.s32.totalorder %s1197_s30, 0 }
  0x11   : > { %p275_p2 = scmp.lt.s32.totalorder %s1120_s29, 3  ;;  %s1385_s2 = sld [smem:[#allocation25_spill]] }
  0x12   : > { %s1122_s12 = smov [#allocation7]   ;;  %p757_p6 = scmp.ge.s32.totalorder %s1120_s29, 2 }
  0x13   : > { %p1205_p3 = pnand %p752_p0, %p275_p2  ;;  %s290_s13 = sshll.u32 %s1122_s12, 4  ;;  %s291_s13 = int_to_ptr.vmem [resolvable:$true] %s290_s13 }
  0x14   : > { %s1387_s3 = sld [smem:[#allocation26_spill]]  ;;  %s1123_s17 = smov 128  }
  0x15   : > { %p793_p4 = pneg %p1205_p3  ;;  %s1124_s18 = smov 8  }
  0x16   : > { %s1125_s19 = smov [#allocation8]   ;;  %s751_s21 = sadd.s32 4294967294, %s1120_s29  }
  0x17   : > { %s288_s10 = sshll.u32 %s1385_s2, 4  ;;  %p794_p5 = pnand %p793_p4, %p73_p1  ;;  %s289_s10 = int_to_ptr.hbm [resolvable:$true] %s288_s10 }
  0x18   : > { %s306_s20 = sshll.u32 %s1125_s19, 4  ;;  %s50_s22 = sadd.s32 1, %s1116_s28  ;;  %s307_s20 = int_to_ptr.vmem [resolvable:$true] %s306_s20 }
  0x19   : > { %796 = dma.hbm_to_vmem [thread:$0]  (!%p794_p5), %s289_s10, 512, %s291_s13, [#allocation6], %s1123_s17, %s1123_s17, %s1124_s18  }
  0x1a   : > { %s304_s16 = sshll.u32 %s1387_s3, 4  ;;  %p52_p7 = scmp.ge.s32.totalorder %s50_s22, 2  ;;  %s305_s16 = int_to_ptr.hbm [resolvable:$true] %s304_s16 }
  0x1b   : > { %799 = dma.hbm_to_vmem [thread:$0]  (!%p794_p5), %s305_s16, 512, %s307_s20, [#allocation9], %s1123_s17, %s1123_s17, %s1124_s18  }
  0x1c   : > { %s59_s23 = sadd.s32 1, %s1108_s26  ;;  %p66_p8 = scmp.ne.s32.totalorder %s1108_s26, %s1104_s25 }
  0x1d   : > { %p67_p9 = scmp.eq.s32.totalorder %s1120_s29, 0  ;;  %s1404_s22 = smov (%p52_p7, %s50_s22), 0 }
  0x1e   : > { %1388 = sst [smem:[#allocation22_spill]] %s1404_s22  ;;  %p72_p11 = scmp.ne.s32.totalorder %s1104_s25, %s1100_s24 }
  0x1f   : > { %p1225_p10 = por %p67_p9, %p66_p8  ;;  %s54_s9 = ssub.s32 %s1116_s28, %s1404_s22 }
  0x20   : > { %p232_p12 = scmp.eq.s32.totalorder %s1197_s30, 1  ;;  %p57_p13 = scmp.eq.s32.totalorder %s54_s9, 0 }
  0x21   : > { %p1236_p0 = por %p73_p1, %p72_p11  ;;  %p238_p4 = scmp.eq.s32.totalorder %s751_s21, 1 }
  0x22   : > { %p1240_p2 = por %p232_p12, %p66_p8  ;;  %p816_p7 = scmp.lt.s32.totalorder %s1120_s29, 2 }
  0x23   : > { %s1245_s13 = scalar_select %p57_p13, %s1108_s26, %s59_s23  }
  0x24   : > { %p1247_p5 = por %p238_p4, %p72_p11  ;;  %s332_s15 = sand.u32 1, %s1108_s26  }
  0x25   : > { %1392 = sst [smem:[#allocation23_spill]] %s1245_s13  ;;  %s759_s16 = sshll.u32 %s1116_s28, 3 }
  0x26   : > { %s1393_s14 = scalar_select %p1247_p5, 1, 0 }
  0x27   : > { %s758_s17 = sshll.u32 %s332_s15, 3  ;;  %s341_s20 = scalar_lea.hbm %s1367_s0, %s759_s16 }
  0x28   : > { %1394 = sst [smem:[#allocation24_spill]] %s1393_s14  ;;  %s343_s9 = sshll.u32 %s341_s20, 4  ;;  %s344_s9 = int_to_ptr.hbm [resolvable:$true] %s343_s9 }
  0x29   : > { %s336_s2 = scalar_lea.vmem [#allocation2], %s758_s17  ;;  %p801_p8 = pnand %p816_p7, %p1225_p10 }
  0x2a   : > { %s345_s3 = sshll.u32 %s336_s2, 4  ;;  %s361_s22 = scalar_lea.hbm %s1368_s1, %s759_s16  ;;  %s346_s3 = int_to_ptr.vmem [resolvable:$true] %s345_s3 }
  0x2b   : > { %s352_s13 = sand.u32 1, %s1120_s29   ;;  %s333_s14 = scalar_lea.sflag [#allocation3], %s332_s15 }
  0x2c   : > { %803 = dma.hbm_to_vmem [thread:$0]  (!%p801_p8), %s344_s9, 128, %s346_s3, %s333_s14  }
  0x2d   : > { %s363_s28 = sshll.u32 %s361_s22, 4  ;;  %s356_s26 = scalar_lea.vmem [#allocation5], %s758_s17  ;;  %s364_s28 = int_to_ptr.hbm [resolvable:$true] %s363_s28 }
  0x2e   : > { %s365_s24 = sshll.u32 %s356_s26, 4  ;;  %s353_s18 = scalar_lea.sflag [#allocation6], %s352_s13  ;;  %s366_s24 = int_to_ptr.vmem [resolvable:$true] %s365_s24 }
  0x2f   : > { %806 = dma.hbm_to_vmem [thread:$0]  (!%p801_p8), %s364_s28, 128, %s366_s24, %s353_s18  }
  0x30   : > { %374 = sbr.rel (%p1205_p3) target bundleno = 212 (0xd4), region = 44  ;;  %s1266_s2 = sand.u32 (!%p1205_p3), 1, %s1104_s25  }
  0x31   : > { %s1269_s8 = sshll.u32 (!%p1205_p3), %s1266_s2, 3  ;;  %s377_s3 = scalar_lea.sflag (!%p1205_p3), [#allocation3], %s1266_s2 }
  0x32   : > { %s380_s22 = scalar_lea.vmem (!%p1205_p3), [#allocation2], %s1269_s8 }
  0x35   : > { %1075 = dma.done.wait (%p1236_p0), %s377_s3, 128  }
  0x36   : > { %1077 = vsyncadd (%p1236_p0), %s377_s3, 4294967168  ;;  %s386_s24 = sand.u32 1, %s1197_s30   ;;  %s390_s28 = scalar_lea.vmem [#allocation5], %s1269_s8 }
  0x37   : > { %s387_s26 = scalar_lea.sflag [#allocation6], %s386_s24 }
  0x38   : > { %1079 = dma.done.wait (%p1236_p0), %s387_s26, 128  }
  0x39   : > { %1081 = vsyncadd (%p1236_p0), %s387_s26, 4294967168 }
  0x3a   : > { %1083 = dma.done.wait (%p73_p1), [#allocation6], 512  }
  0x3b   : > { %1085 = vsyncadd (%p73_p1), [#allocation6], 4294966784 }
  0x3c   : > { %1087 = dma.done.wait (%p73_p1), [#allocation9], 512  }
  0x3d   : > { %1089 = vsyncadd (%p73_p1), [#allocation9], 4294966784  ;;  %v458_v0 = vld [vmem:[#allocation7 + $0x18] sm:$0xff]  ;;  %v457_v2 = vld [vmem:[#allocation7 + $0x10] sm:$0xff]  ;;  %vm463_vm0 = vcmask 261120   ;;  %s773_s30 = sshll.u32 %s1112_s27, 3 }
  0x3e   : > { %v491_v1 = vld [vmem:[#allocation8 + $0x18] sm:$0xff]  ;;  %479 = vmatpush.msra.mxu0 %v458_v0  ;;  %v490_v3 = vld [vmem:[#allocation8 + $0x10] sm:$0xff]  ;;  %v456_v4 = vld [vmem:[#allocation7 + $0x8] sm:$0xff]  ;;  %s539_s13 = scalar_lea.hbm %s1373_s6, %s773_s30  ;;  %s555_s16 = scalar_lea.hbm %s1374_s7, %s773_s30 }
  0x3f   : > { %511 = vmatpush.msra.mxu1 %v491_v1  ;;  %v489_v5 = vld [vmem:[#allocation8 + $0x8] sm:$0xff]  ;;  %v455_v6 = vld [vmem:[#allocation7] sm:$0xff]  ;;  %v487_v9 = vld [vmem:[%s390_s28] sm:$0xff]  ;;  %s440_s21 = scalar_lea.vmem [#allocation10], %s1269_s8  ;;  %s543_s27 = sshll.u32 %s539_s13, 4  ;;  %s544_s27 = int_to_ptr.hbm [resolvable:$true] %s543_s27 }
  0x40   : > { %480 = vmatpush.msra.mxu0 %v457_v2  ;;  %v488_v7 = vld [vmem:[#allocation8] sm:$0xff]  ;;  %s1307_s23 = sshll.u32 %s440_s21, 4  ;;  %s447_s18 = scalar_lea.vmem [#allocation11], %s1269_s8  ;;  %s542_s23 = int_to_ptr.vmem [resolvable:$true] %s1307_s23 }
  0x41   : > { %512 = vmatpush.msra.mxu1 %v490_v3  ;;  %v454_v8 = vld [vmem:[%s380_s22] sm:$0xff]  ;;  %s1310_s3 = sshll.u32 %s447_s18, 4  ;;  %s559_s22 = sshll.u32 %s555_s16, 4  ;;  %s558_s3 = int_to_ptr.vmem [resolvable:$true] %s1310_s3  ;;  %s1314_s22 = int_to_ptr.hbm [resolvable:$true] %s559_s22 }
  0x42   : > { %481 = vmatpush.msra.mxu0 %v456_v4  ;;  %v872_v10 = vld [vmem:[%s1371_s4] ss:$0 sm:$0xff]  ;;  %s522_s24 = scalar_lea.sflag [#allocation4], %s1266_s2  ;;  %s1008_s26 = sshra.s32 %s544_s27, 4  ;;  %s1009_s26 = int_to_ptr.hbm [resolvable:$true] %s1008_s26 }
  0x43   : > { %513 = vmatpush.msra.mxu1 %v489_v5  ;;  %v873_v11 = vld [vmem:[%s1372_s5] ss:$0 sm:$0xff]  ;;  %s1010_s8 = scalar_lea.hbm %s1009_s26, 8  ;;  %s1014_s11 = scalar_lea.hbm %s1373_s6, 16 }
  0x44   : > { %482 = vmatpush.msra.mxu0 %v455_v6  ;;  %p1011_p1 = scmp.ne.s32.totalorder %s1009_s26, %s1010_s8  ;;  %p1015_p10 = scmp.lt.s32.totalorder %s1009_s26, %s1373_s6 }
  0x45   : > { %514 = vmatpush.msra.mxu1 %v488_v7  ;;  %769 = vmatmul.msk.f32.vlgmr.msra.gmra.mxu0 %vm463_vm0, %v454_v8  ;;  %p1016_p11 = scmp.lt.s32.totalorder %s1014_s11, %s1010_s8 }
  0x46   : > { %770 = vmatmul.msk.f32.vlgmr.msra.gmra.mxu1 %vm463_vm0, %v487_v9  ;;  %p1012_p3 = pnand %p1011_p1, %p1240_p2 }
  0x47   : > { %p1017_p12 = por %p1016_p11, %p1015_p10 }
  0x48   : > { %p1013_p9 = pneg %p1012_p3 }
  0x4a   : > { %p1018_p13 = pnand %p1017_p12, %p1013_p9 }
  0xc2   : > { %v484_v12 = vpop.f32.mrf.mxu0 }
  0xc3   : > { %v516_v13 = vpop.f32.mrf.mxu1  ;;  %v485_v14 = vadd.f32 %v872_v10, %v484_v12 }
  0xc4   : > { %v517_v15 = vadd.f32 %v873_v11, %v516_v13 }
  0xc5   : > { %519 = vst.msk [vmem:[%s440_s21] sm:$0xff] %vm463_vm0, %v485_v14 }
  0xc6   : > { %1021 = shalt.err (!%p1018_p13)
}
  0xc7   : > { %789 = dma.vmem_to_hbm [thread:$0]  (%p1240_p2), %s542_s23, 128, %s544_s27, %s522_s24   ;;  %520 = vst.msk [vmem:[%s447_s18] sm:$0xff] %vm463_vm0, %v517_v15 }
  0xc8   : > { %s527_s14 = scalar_lea.sflag [#allocation12], %s1266_s2  ;;  %s1036_s15 = sshra.s32 %s1314_s22, 4  ;;  %s1037_s15 = int_to_ptr.hbm [resolvable:$true] %s1036_s15 }
  0xc9   : > { %s1038_s16 = scalar_lea.hbm %s1037_s15, 8  ;;  %s1042_s20 = scalar_lea.hbm %s1374_s7, 16 }
  0xca   : > { %p1039_p0 = scmp.ne.s32.totalorder %s1037_s15, %s1038_s16  ;;  %p1043_p8 = scmp.lt.s32.totalorder %s1037_s15, %s1374_s7 }
  0xcb   : > { %p1044_p1 = scmp.lt.s32.totalorder %s1042_s20, %s1038_s16 }
  0xcc   : > { %p1040_p4 = pnand %p1039_p0, %p1240_p2 }
  0xcd   : > { %p1045_p3 = por %p1044_p1, %p1043_p8 }
  0xce   : > { %p1041_p7 = pneg %p1040_p4 }
  0xd0   : > { %p1046_p9 = pnand %p1045_p3, %p1041_p7 }
  0xd2   : > { %1049 = shalt.err (!%p1046_p9)
}
  0xd3   : > { %790 = dma.vmem_to_hbm [thread:$0]  (%p1240_p2), %s558_s3, 128, %s1314_s22, %s527_s14  }
  0xd4 PF: > { %s1395_s2 = sld [smem:[#allocation19_spill]]  ;;  %p808_p10 = pnand %p757_p6, %p1247_p5 }
  0xd6   : > { %p809_p11 = pneg %p808_p10 }
  0xda   : > { %s571_s27 = sand.u32 1, %s1395_s2  }
  0xdb   : > { %s572_s18 = scalar_lea.sflag [#allocation4], %s571_s27 }
  0xdc   : > { %1091 = dma.done.wait (%p809_p11), %s572_s18, 128  }
  0xdd   : > { %1093 = vsyncadd (%p809_p11), %s572_s18, 4294967168  ;;  %s582_s24 = scalar_lea.sflag [#allocation12], %s571_s27 }
  0xde   : > { %1095 = dma.done.wait (%p809_p11), %s582_s24, 128  }
  0xdf   : > { %1097 = vsyncadd (%p809_p11), %s582_s24, 4294967168  ;;  %s31_s29 = sadd.s32 1, %s1120_s29   ;;  %s1397_s12 = sld [smem:[#allocation20_spill]] }
  0xe0   : > { %p28_p12 = scmp.ge.s32.totalorder %s31_s29, 4   ;;  %s1398_s26 = sld [smem:[#allocation23_spill]] }
  0xe1   : > { %s1399_s27 = sld [smem:[#allocation21_spill]]  ;;  %s1401_s24 = smov %s1104_s25 }
  0xe2   : > { %s1400_s28 = sld [smem:[#allocation22_spill]]  ;;  %30 = sbr.rel (!%p28_p12) target bundleno = 14 (0xe), region = 135 }
  0xe5   : > { %s1402_s25 = smov %s1397_s12 }
  0xe7   :  { %588 = vsyncpa [#allocation3], 1 }
  0xe8   :  { %590 = vsyncpa [#allocation3 + $0x1], 1 }
  0xe9   :  { %591 = vsyncpa [#allocation6], 1 }
  0xea   :  { %593 = vsyncpa [#allocation6 + $0x1], 1 }
  0xeb   :  { %594 = vsyncpa [#allocation9], 1 }
  0xec   :  { %595 = vsyncpa [#allocation4], 1 }
  0xed   :  { %597 = vsyncpa [#allocation4 + $0x1], 1 }
  0xee   :  { %598 = vsyncpa [#allocation12], 1 }
  0xef   :  { %600 = vsyncpa [#allocation12 + $0x1], 1 }

</bundles_post_ra>
